<compile_context>
chip_gen: v7x
topology: tpu7x:2x2x1
jax: 0.10.0
libtpu: 0.0.40
codegen_flags: <defaults>
</compile_context>

<pallas_src>
import functools

import jax
import jax.numpy as jnp
from jax import lax
from jax.experimental import pallas as pl
from jax.experimental.pallas import tpu as pltpu

EPSILON = 1e-40          # value used by the PyTorch module
# 1e-40 is subnormal in f32; TPUs flush subnormals to zero, which would turn
# the clamp floor into 0 and -log(0) into +inf.  Use the smallest normal-range
# f32 floor instead (deliberate deviation; identical for in-range inputs).
CLAMP_MIN = 1.2e-38

LANE = 128
SUBLANE = 8


def _loglik(r, g, label_smoothing):
    """Positive log-likelihood per element (loss is the negated mean)."""
    r = r.astype(jnp.float32)
    g = g.astype(jnp.float32)
    p_real = jnp.clip(r, CLAMP_MIN, 1.0)
    p_gen = jnp.clip(1.0 - g, CLAMP_MIN, 1.0)
    if label_smoothing:
        # PyTorch clamps 1 - (already clamped) logits_real, mirrored here.
        p_fake = jnp.clip(1.0 - p_real, CLAMP_MIN, 1.0)
        # 0.9*log(pr) + 0.1*log(pf) + log(pg) == 0.9*log(pr*pg) + 0.1*log(pf*pg)
        # (2 EUP pushes instead of 3).  Clamp each product so it cannot
        # underflow to 0 in f32 (both factors may sit at CLAMP_MIN).
        return (0.9 * jnp.log(jnp.maximum(p_real * p_gen, CLAMP_MIN))
                + 0.1 * jnp.log(jnp.maximum(p_fake * p_gen, CLAMP_MIN)))
    # log(a) + log(b) == log(a*b): one EUP push, product clamped vs underflow.
    return jnp.log(jnp.maximum(p_real * p_gen, CLAMP_MIN))


def _dloss_kernel(real_ref, gen_ref, out_ref, acc_ref, *,
                  label_smoothing, block_rows, steps_per_core,
                  total_blocks, last_block_valid, needs_mask, has_dup):
    c = pl.program_id(0)          # core split (size 1 except on v7x)
    i = pl.program_id(1)          # streaming step within this core's range

    @pl.when(i == 0)
    def _():
        acc_ref[...] = jnp.zeros_like(acc_ref)

    raw_idx = c * steps_per_core + i   # logical block index (may overshoot)

    ll = _loglik(real_ref[...], gen_ref[...], label_smoothing)

    def fold(x):
        # (block_rows, LANE) -> (SUBLANE, LANE): sublane-grouped reshape is
        # layout-free; the axis-0 sum is plain VPU vreg adds (no XLU).
        return jnp.sum(x.reshape(block_rows // SUBLANE, SUBLANE, LANE), axis=0)

    if needs_mask:
        # Interior, fully-valid blocks: plain accumulate, zero mask work.
        @pl.when(raw_idx < total_blocks - 1)
        def _():
            acc_ref[...] += fold(ll)

        # Final (ragged) block: mask the invalid tail elements only here.
        @pl.when(raw_idx == total_blocks - 1)
        def _():
            elem = (lax.broadcasted_iota(jnp.int32, (block_rows, LANE), 0) * LANE
                    + lax.broadcasted_iota(jnp.int32, (block_rows, LANE), 1))
            acc_ref[...] += fold(jnp.where(elem < last_block_valid, ll, 0.0))
        # Clamped duplicate steps (raw_idx >= total_blocks) accumulate nothing.
    elif has_dup:
        @pl.when(raw_idx < total_blocks)
        def _():
            acc_ref[...] += fold(ll)
    else:
        acc_ref[...] += fold(ll)

    @pl.when(i == pl.num_programs(1) - 1)
    def _():
        # Write the (8,128) partial sums lane-dense; final tiny reduction and
        # the single negation / division happen in the wrapper.
        out_ref[...] = acc_ref[...].reshape(out_ref.shape)


def _detect_num_cores():
    # Split the grid across TensorCores only where it exists (v7x has 2 TCs).
    try:
        kind = jax.devices()[0].device_kind.lower()
    except Exception:
        return 1
    return 2 if "v7" in kind else 1


def dloss(logits_real, logits_gen, label_smoothing: bool = False,
          block_rows: int = 2048):
    """Pallas equivalent of DLoss.forward: returns the scalar mean loss."""
    assert logits_real.shape == logits_gen.shape
    n = 1
    for d in logits_real.shape:
        n *= int(d)
    assert n > 0

    # Keep the input dtype (e.g. bf16) — the kernel upcasts per element, so
    # HBM traffic stays at the native width.
    flat_r = logits_real.reshape(-1)
    flat_g = logits_gen.reshape(-1)

    tail_ll = jnp.float32(0.0)

    if n < SUBLANE * LANE:
        # Tiny input: pad to a single (8,128) block (trivial copy); the padded
        # elements are masked in-kernel via n_valid.
        pad = SUBLANE * LANE - n
        main_r = jnp.pad(flat_r, (0, pad))
        main_g = jnp.pad(flat_g, (0, pad))
        n_valid = n
        rows = SUBLANE
    else:
        # Lane-aligned prefix streams through the kernel; the <128-element
        # ragged tail (if any) is evaluated with plain jnp — no full-array pad.
        n_main = (n // LANE) * LANE
        n_valid = n_main
        rows = n_main // LANE
        if n_main == n:
            main_r, main_g = flat_r, flat_g
        else:
            main_r = lax.slice(flat_r, (0,), (n_main,))
            main_g = lax.slice(flat_g, (0,), (n_main,))
            tail_r = lax.slice(flat_r, (n_main,), (n,))
            tail_g = lax.slice(flat_g, (n_main,), (n,))
            tail_ll = jnp.sum(_loglik(tail_r, tail_g, label_smoothing))

    r2 = main_r.reshape(rows, LANE)
    g2 = main_g.reshape(rows, LANE)

    # Block sizing: multiple of 8 sublanes, never larger than the row count.
    block_rows = max(SUBLANE, (int(block_rows) // SUBLANE) * SUBLANE)
    block_rows = min(block_rows, (rows // SUBLANE) * SUBLANE)
    total_blocks = pl.cdiv(rows, block_rows)

    num_cores = _detect_num_cores()
    num_cores = min(num_cores, total_blocks)
    steps_per_core = pl.cdiv(total_blocks, num_cores)

    last_block_valid = n_valid - (total_blocks - 1) * block_rows * LANE
    needs_mask = last_block_valid != block_rows * LANE
    has_dup = steps_per_core * num_cores > total_blocks

    def in_map(c, i):
        # Clamp so over-provisioned (core, step) pairs re-read the last real
        # block instead of going out of bounds; their contribution is skipped.
        return (jnp.minimum(c * steps_per_core + i, total_blocks - 1), 0)

    kernel = functools.partial(
        _dloss_kernel,
        label_smoothing=label_smoothing,
        block_rows=block_rows,
        steps_per_core=steps_per_core,
        total_blocks=total_blocks,
        last_block_valid=last_block_valid,
        needs_mask=needs_mask,
        has_dup=has_dup,
    )

    if num_cores > 1:
        outer_sem = getattr(pltpu, "CORE_PARALLEL", pltpu.ARBITRARY)
    else:
        outer_sem = pltpu.ARBITRARY

    out = pl.pallas_call(
        kernel,
        out_shape=jax.ShapeDtypeStruct((num_cores, SUBLANE, LANE), jnp.float32),
        grid_spec=pltpu.PrefetchScalarGridSpec(
            num_scalar_prefetch=0,
            grid=(num_cores, steps_per_core),
            in_specs=[
                pl.BlockSpec((block_rows, LANE), in_map),
                pl.BlockSpec((block_rows, LANE), in_map),
            ],
            out_specs=pl.BlockSpec((1, SUBLANE, LANE), lambda c, i: (c, 0, 0)),
            scratch_shapes=[pltpu.VMEM((SUBLANE, LANE), jnp.float32)],
        ),
        compiler_params=pltpu.CompilerParams(
            dimension_semantics=(outer_sem, pltpu.ARBITRARY)),
    )(r2, g2)

    total_ll = jnp.sum(out) + tail_ll
    return -total_ll / jnp.float32(n)


def dloss_ref(logits_real, logits_gen, label_smoothing: bool = False):
    """Plain-JAX reference mirroring the PyTorch module (same safe clamp)."""
    p_real = jnp.clip(logits_real.astype(jnp.float32), CLAMP_MIN, 1.0)
    d_loss_real = -jnp.log(p_real)
    if label_smoothing:
        p_fake = jnp.clip(1.0 - p_real, CLAMP_MIN, 1.0)
        d_loss_fake = -jnp.log(p_fake)
        d_loss_real = 0.9 * d_loss_real + 0.1 * d_loss_fake
    p_gen = jnp.clip(1.0 - logits_gen.astype(jnp.float32), CLAMP_MIN, 1.0)
    d_loss_gen = -jnp.log(p_gen)
    return jnp.mean(d_loss_real + d_loss_gen)


if __name__ == "__main__":
    key = jax.random.PRNGKey(0)
    k1, k2, k3, k4 = jax.random.split(key, 4)

    ok = True

    # Discriminator outputs: per-timestep probabilities in (0, 1), (batch, seq, 1).
    batch, seq = 4, 256
    logits_real = jax.random.uniform(k1, (batch, seq, 1), jnp.float32,
                                     minval=0.05, maxval=0.95)
    logits_gen = jax.random.uniform(k2, (batch, seq, 1), jnp.float32,
                                    minval=0.05, maxval=0.95)
    for smooth in (False, True):
        out = jax.block_until_ready(dloss(logits_real, logits_gen,
                                          label_smoothing=smooth))
        ref = dloss_ref(logits_real, logits_gen, label_smoothing=smooth)
        if not jnp.allclose(out, ref, rtol=1e-5, atol=1e-5):
            ok = False
            print("MISMATCH", smooth, float(out), float(ref))

    # Ragged (lane-unaligned) size exercises the masked final-block path.
    lr2 = jax.random.uniform(k3, (3, 70, 1), jnp.float32, minval=0.05, maxval=0.95)
    lg2 = jax.random.uniform(k4, (3, 70, 1), jnp.float32, minval=0.05, maxval=0.95)
    out2 = jax.block_until_ready(dloss(lr2, lg2, label_smoothing=False))
    ref2 = dloss_ref(lr2, lg2, label_smoothing=False)
    if not jnp.allclose(out2, ref2, rtol=1e-5, atol=1e-5):
        ok = False
        print("MISMATCH ragged", float(out2), float(ref2))

    if ok:
        print("KERNEL_OK")
</pallas_src>

<mosaic_0001>
module attributes {stable_mosaic.version = 11 : i64} {
  func.func @_dloss_kernel(%arg0: i32, %arg1: i32, %arg2: memref<8x128xf32, #tpu.memory_space<vmem>>, %arg3: memref<8x128xf32, #tpu.memory_space<vmem>>, %arg4: memref<1x8x128xf32, #tpu.memory_space<vmem>>, %arg5: memref<8x128xf32, #tpu.memory_space<vmem>>) attributes {dimension_semantics = [#tpu.dimension_semantics<arbitrary>, #tpu.dimension_semantics<arbitrary>], iteration_bounds = array<i64: 1, 1>, scalar_prefetch = 0 : i64, scratch_operands = 1 : i64, tpu.core_type = #tpu.core_type<tc>, window_params = [{transform_indices = @transform_0, window_bounds = array<i64: 8, 128>}, {transform_indices = @transform_1, window_bounds = array<i64: 8, 128>}, {transform_indices = @transform_2, window_bounds = array<i64: 1, 8, 128>}]} {
    %c0_i32 = arith.constant 0 : i32
    %0 = arith.cmpi eq, %arg1, %c0_i32 : i32
    %1 = arith.extui %0 : i1 to i32
    %c0_i32_0 = arith.constant 0 : i32
    %2 = arith.cmpi ne, %1, %c0_i32_0 : i32
    scf.if %2 {
      %cst_16 = arith.constant 0.000000e+00 : f32
      %27 = vector.broadcast %cst_16 : f32 to vector<8x128xf32>
      %c0_17 = arith.constant 0 : index
      %c0_18 = arith.constant 0 : index
      %28 = vector.load %arg5[%c0_17, %c0_18] : memref<8x128xf32, #tpu.memory_space<vmem>>, vector<8x128xf32>
      tpu.vector_store %arg5[%c0_17, %c0_18], %27 {strides = array<i32>} : memref<8x128xf32, #tpu.memory_space<vmem>>, vector<8x128xf32>,
    } else {
    }
    %c0 = arith.constant 0 : index
    %c0_1 = arith.constant 0 : index
    %3 = vector.load %arg2[%c0, %c0_1] : memref<8x128xf32, #tpu.memory_space<vmem>>, vector<8x128xf32>
    %c0_2 = arith.constant 0 : index
    %c0_3 = arith.constant 0 : index
    %4 = vector.load %arg3[%c0_2, %c0_3] : memref<8x128xf32, #tpu.memory_space<vmem>>, vector<8x128xf32>
    %cst = arith.constant 1.200000e-38 : f32
    %cst_4 = arith.constant 1.000000e+00 : f32
    %5 = vector.broadcast %cst : f32 to vector<8x128xf32>
    %6 = arith.maximumf %5, %3 : vector<8x128xf32>
    %7 = vector.broadcast %cst_4 : f32 to vector<8x128xf32>
    %8 = arith.minimumf %7, %6 : vector<8x128xf32>
    %cst_5 = arith.constant 1.000000e+00 : f32
    %9 = vector.broadcast %cst_5 : f32 to vector<8x128xf32>
    %10 = arith.subf %9, %4 : vector<8x128xf32>
    %cst_6 = arith.constant 1.200000e-38 : f32
    %cst_7 = arith.constant 1.000000e+00 : f32
    %11 = vector.broadcast %cst_6 : f32 to vector<8x128xf32>
    %12 = arith.maximumf %11, %10 : vector<8x128xf32>
    %13 = vector.broadcast %cst_7 : f32 to vector<8x128xf32>
    %14 = arith.minimumf %13, %12 : vector<8x128xf32>
    %15 = arith.mulf %8, %14 : vector<8x128xf32>
    %cst_8 = arith.constant 1.200000e-38 : f32
    %16 = vector.broadcast %cst_8 : f32 to vector<8x128xf32>
    %17 = arith.maximumf %15, %16 : vector<8x128xf32>
    %18 = math.log %17 : vector<8x128xf32>
    %c0_9 = arith.constant 0 : index
    %c0_10 = arith.constant 0 : index
    %19 = vector.load %arg5[%c0_9, %c0_10] : memref<8x128xf32, #tpu.memory_space<vmem>>, vector<8x128xf32>
    %20 = vector.shape_cast %18 : vector<8x128xf32> to vector<1x8x128xf32>
    %cst_11 = arith.constant dense<0.000000e+00> : vector<8x128xf32>
    %21 = vector.multi_reduction <add>, %20, %cst_11 [0] : vector<1x8x128xf32> to vector<8x128xf32>
    %22 = arith.addf %19, %21 : vector<8x128xf32>
    %c0_12 = arith.constant 0 : index
    %c0_13 = arith.constant 0 : index
    %23 = vector.load %arg5[%c0_12, %c0_13] : memref<8x128xf32, #tpu.memory_space<vmem>>, vector<8x128xf32>
    tpu.vector_store %arg5[%c0_12, %c0_13], %22 {strides = array<i32>} : memref<8x128xf32, #tpu.memory_space<vmem>>, vector<8x128xf32>,
    %c0_i32_14 = arith.constant 0 : i32
    %24 = arith.cmpi eq, %arg1, %c0_i32_14 : i32
    %25 = arith.extui %24 : i1 to i32
    %c0_i32_15 = arith.constant 0 : i32
    %26 = arith.cmpi ne, %25, %c0_i32_15 : i32
    scf.if %26 {
      %c0_16 = arith.constant 0 : index
      %c0_17 = arith.constant 0 : index
      %27 = vector.load %arg5[%c0_16, %c0_17] : memref<8x128xf32, #tpu.memory_space<vmem>>, vector<8x128xf32>
      %28 = vector.shape_cast %27 : vector<8x128xf32> to vector<1x8x128xf32>
      %c0_18 = arith.constant 0 : index
      %c0_19 = arith.constant 0 : index
      %c0_20 = arith.constant 0 : index
      %29 = vector.load %arg4[%c0_18, %c0_19, %c0_20] : memref<1x8x128xf32, #tpu.memory_space<vmem>>, vector<1x8x128xf32>
      tpu.vector_store %arg4[%c0_18, %c0_19, %c0_20], %28 {strides = array<i32>} : memref<1x8x128xf32, #tpu.memory_space<vmem>>, vector<1x8x128xf32>,
    } else {
    }
    return
  }
  func.func @transform_0(%arg0: i32, %arg1: i32) -> (i32, i32) {
    %c1_i32 = arith.constant 1 : i32
    %0 = arith.muli %arg0, %c1_i32 : i32
    %1 = arith.addi %0, %arg1 : i32
    %c0_i32 = arith.constant 0 : i32
    %2 = arith.minsi %1, %c0_i32 : i32
    %c0_i32_0 = arith.constant 0 : i32
    %c0_i32_1 = arith.constant 0 : i32
    return %2, %c0_i32_0 : i32, i32
  }
  func.func @transform_1(%arg0: i32, %arg1: i32) -> (i32, i32) {
    %c1_i32 = arith.constant 1 : i32
    %0 = arith.muli %arg0, %c1_i32 : i32
    %1 = arith.addi %0, %arg1 : i32
    %c0_i32 = arith.constant 0 : i32
    %2 = arith.minsi %1, %c0_i32 : i32
    %c0_i32_0 = arith.constant 0 : i32
    %c0_i32_1 = arith.constant 0 : i32
    return %2, %c0_i32_0 : i32, i32
  }
  func.func @transform_2(%arg0: i32, %arg1: i32) -> (i32, i32, i32) {
    %c0_i32 = arith.constant 0 : i32
    %c0_i32_0 = arith.constant 0 : i32
    %c0_i32_1 = arith.constant 0 : i32
    return %arg0, %c0_i32, %c0_i32_0 : i32, i32, i32
  }
}

</mosaic_0001>

<bundles_post_ra>
// kernel: tpu_custom_call.1
= control target key start
LH: loop header
LB: loop body
LE: loop exit
PB: predicated region body
PF: predicated region fallthrough
CT: control target
= control target key end

     0   :  { %7 = vsyncpa [#allocation4], 0  ;;  %s228_s0 = inlined_call_operand.hbm [shape: f32[8,128], index: 0, kind: input, shape index: {}]   ;;  %s229_s1 = inlined_call_operand.hbm [shape: f32[8,128], index: 1, kind: input, shape index: {}]   ;;  %s230_s2 = inlined_call_operand.hbm [shape: f32[1,8,128], index: 2, kind: output, shape index: {}]  }
   0x1   :  { %8 = vsyncpa [#allocation7], 0 }
   0x2   :  { %9 = vsyncpa [#allocation5], 0  ;;  %s174_s9 = smov [#allocation3]   ;;  %s175_s11 = smov [#allocation6]  }
   0x3   :  { %s21_s10 = sshll.u32 %s174_s9, 4  ;;  %s36_s12 = sshll.u32 %s175_s11, 4  ;;  %s22_s10 = int_to_ptr.vmem [resolvable:$true] %s21_s10  ;;  %s37_s12 = int_to_ptr.vmem [resolvable:$true] %s36_s12 }
   0x4   :  { %s102_s15 = scalar_lea.hbm %s228_s0, 128 }
   0x5   :  { %p103_p0 = scmp.ne.s32.totalorder %s228_s0, %s102_s15  ;;  %p106_p1 = scmp.lt.u32.totalorder %s102_s15, %s228_s0 }
   0x7   :  { %p108_p2 = pnand %p106_p1, %p103_p0 }
   0x9   :  { %111 = shalt.err (!%p108_p2)
}
   0xa   :  { %s112_s20 = scalar_lea.vmem %s22_s10, 128  ;;  %p117_p4 = scmp.lt.s32.totalorder %s22_s10, %s22_s10 }
   0xb   :  { %p113_p3 = scmp.ne.s32.totalorder %s22_s10, %s112_s20  ;;  %p118_p5 = scmp.lt.s32.totalorder %s112_s20, %s112_s20 }
   0xd   :  { %p119_p6 = por %p118_p5, %p117_p4 }
   0xf   :  { %p120_p7 = pnand %p119_p6, %p113_p3 }
  0x11   :  { %123 = shalt.err (!%p120_p7)
}
  0x12   :  { %24 = dma.hbm_to_vmem [thread:$0]  %s228_s0, 128, %s22_s10, [#allocation4]  }
  0x13   :  { %s124_s25 = scalar_lea.hbm %s229_s1, 128 }
  0x14   :  { %p125_p8 = scmp.ne.s32.totalorder %s229_s1, %s124_s25  ;;  %p128_p9 = scmp.lt.u32.totalorder %s124_s25, %s229_s1 }
  0x16   :  { %p130_p10 = pnand %p128_p9, %p125_p8 }
  0x18   :  { %133 = shalt.err (!%p130_p10)
}
  0x19   :  { %s134_s30 = scalar_lea.vmem %s37_s12, 128  ;;  %p139_p12 = scmp.lt.s32.totalorder %s37_s12, %s37_s12 }
  0x1a   :  { %p135_p11 = scmp.ne.s32.totalorder %s37_s12, %s134_s30  ;;  %p140_p13 = scmp.lt.s32.totalorder %s134_s30, %s134_s30 }
  0x1c   :  { %p141_p0 = por %p140_p13, %p139_p12 }
  0x1e   :  { %p142_p1 = pnand %p141_p0, %p135_p11 }
  0x20   :  { %145 = shalt.err (!%p142_p1)
}
  0x21   :  { %39 = dma.hbm_to_vmem [thread:$0]  %s229_s1, 128, %s37_s12, [#allocation7]  }
  0x22   :  { %168 = dma.done.wait [#allocation4], 128  }
  0x23   :  { %169 = vsyncadd [#allocation4], 4294967168 }
  0x24   :  { %170 = dma.done.wait [#allocation7], 128  }
  0x25   :  { %171 = vsyncadd [#allocation7], 4294967168  ;;  %v57_v0 = vld [vmem:[#allocation3] sm:$0xff]  ;;  %v58_v1 = vld [vmem:[#allocation6] sm:$0xff]  ;;  %s176_s4 = smov [#allocation8]  }
  0x26   :  { %v59_v2 = vmax.f32 %v57_v0, 1.2e-38  ;;  %v61_v3 = vsub.f32 1.0, %v58_v1  ;;  %s83_s5 = sshll.u32 %s176_s4, 4  ;;  %s84_s5 = int_to_ptr.vmem [resolvable:$true] %s83_s5 }
  0x27   :  { %s146_s1 = scalar_lea.vmem %s84_s5, 128  ;;  %p151_p3 = scmp.lt.s32.totalorder %s84_s5, %s84_s5 }
  0x28   :  { %v60_v4 = vmin.f32 %v59_v2, 1.0  ;;  %v62_v5 = vmax.f32 %v61_v3, 1.2e-38  ;;  %p147_p2 = scmp.ne.s32.totalorder %s84_s5, %s146_s1  ;;  %p152_p4 = scmp.lt.s32.totalorder %s146_s1, %s146_s1 }
  0x2a   :  { %v63_v6 = vmin.f32 %v62_v5, 1.0  ;;  %p153_p5 = por %p152_p4, %p151_p3 }
  0x2c   :  { %v64_v7 = vmul.f32 %v63_v6, %v60_v4  ;;  %p154_p6 = pnand %p153_p5, %p147_p2 }
  0x2e   :  { %v65_v8 = vmax.f32 %v64_v7, 1.2e-38 }
  0x30   :  { %100 = vlog2.f32 %v65_v8 }
  0x3a   :  { %v101_v9 = vpop.eup %100 }
  0x3b   :  { %v67_v10 = vmul.f32 0.6931472, %v101_v9 }
  0x3d   :  { %76 = vst [vmem:[#allocation8] sm:$0xff] %v67_v10 }
  0x3e   :  { %157 = shalt.err (!%p154_p6)
}
  0x3f   :  { %s158_s8 = scalar_lea.hbm %s230_s2, 128 }
  0x40   :  { %p159_p7 = scmp.ne.s32.totalorder %s230_s2, %s158_s8  ;;  %p162_p8 = scmp.lt.u32.totalorder %s158_s8, %s230_s2 }
  0x42   :  { %p164_p9 = pnand %p162_p8, %p159_p7 }
  0x44   :  { %167 = shalt.err (!%p164_p9)
}
  0x45   :  { %86 = dma.vmem_to_hbm [thread:$0]  %s84_s5, 128, %s230_s2, [#allocation5]  }
  0x46   :  { %172 = dma.done.wait [#allocation5], 128  }
  0x47   :  { %173 = vsyncadd [#allocation5], 4294967168 }
  0x48   :  { %90 = vsyncpa [#allocation4], 1 }
  0x49   :  { %91 = vsyncpa [#allocation7], 1 }
  0x4a   :  { %92 = vsyncpa [#allocation5], 1 }

</bundles_post_ra>
